<compile_context>
chip_gen: v5e
topology: v5e:2x2
jax: 0.10.0
libtpu: 0.0.40
codegen_flags: <defaults>
</compile_context>

<pallas_src>
import math
import jax
import jax.numpy as jnp
from jax.experimental import pallas as pl
from jax.experimental.pallas import tpu as pltpu


# ---------------------------------------------------------------------------
# Fused kernel
# ---------------------------------------------------------------------------
def _make_batch_mlp_kernel(num_blocks):
    """Kernel refs: (x, [w_i, b_i] * num_blocks, w_final, b_final, out).

    Each block is Linear (BN of the previous block already folded into w, b)
    followed by ReLU; the activation is carried in bf16 between layers.
    """

    def kernel(*refs):
        x_ref = refs[0]
        o_ref = refs[-1]
        h = x_ref[...]                                   # (TM, d_in) bf16
        idx = 1
        for _ in range(num_blocks):
            w_ref, b_ref = refs[idx], refs[idx + 1]
            idx += 2
            z = jnp.dot(h, w_ref[...],
                        preferred_element_type=jnp.float32)          # MXU, f32 acc
            h = jnp.maximum(z + b_ref[...], 0.0).astype(jnp.bfloat16)  # bias + ReLU
        wf_ref, bf_ref = refs[idx], refs[idx + 1]
        out = jnp.dot(h, wf_ref[...],
                      preferred_element_type=jnp.float32) + bf_ref[...]
        o_ref[...] = out.astype(o_ref.dtype)

    return kernel


def _round_up(v, m):
    return ((v + m - 1) // m) * m


def _choose_tile_m(M, cap):
    """Largest row tile that divides M, is a multiple of 8, <= cap, and leaves
    the grid with >= 2 steps when M allows (so both v7x TensorCores get work).
    Returns None if M itself is not a multiple of 8 (caller pads)."""
    if M % 8 != 0:
        return None
    limit = min(cap, M // 2) if M >= 16 else min(cap, M)
    limit = max(limit, 8)
    best = 8
    t = 8
    while t <= limit:
        if M % t == 0:
            best = t
        t += 8
    return best


def batch_mlp_forward(x, params, *, tile_m_cap=512):
    """BatchMLP.forward: x (B, n, d_in) -> (B, n, d_out).  Single fused kernel."""
    B, n, d_in = x.shape
    blocks = params["blocks"]                 # list of (w bf16 (cin,cout), b f32 (1,cout))
    wf, bf = params["final"]                  # (H, d_out) bf16, (1, d_out) f32
    d_out = wf.shape[1]

    M = B * n
    xm = x.reshape(M, d_in).astype(jnp.bfloat16)   # bf16 feed: half the x DMA bytes

    tile_m = _choose_tile_m(M, tile_m_cap)
    padded = False
    if tile_m is None:
        # Rare fallback (M not a multiple of 8): explicit pad + slice.  This
        # costs an extra HBM pass over x/out; avoided entirely when M % 8 == 0.
        tile_m = min(tile_m_cap, _round_up(M, 8))
        M_run = _round_up(M, tile_m)
        xm = jnp.pad(xm, ((0, M_run - M), (0, 0)))
        padded = True
    else:
        M_run = M
    grid = (M_run // tile_m,)

    # Assemble operands + BlockSpecs (row-tiled x / out, resident weights).
    operands = [xm]
    in_specs = [pl.BlockSpec((tile_m, d_in), lambda i: (i, 0))]
    flops = 0
    bytes_accessed = xm.size * 2                           # bf16 input
    for w, b in blocks:
        operands += [w, b]
        in_specs += [
            pl.BlockSpec(w.shape, lambda i: (0, 0)),       # constant index -> DMA'd once
            pl.BlockSpec(b.shape, lambda i: (0, 0)),
        ]
        flops += 2 * M_run * w.shape[0] * w.shape[1]
        bytes_accessed += w.size * 2 + b.size * 4
    operands += [wf, bf]
    in_specs += [
        pl.BlockSpec(wf.shape, lambda i: (0, 0)),
        pl.BlockSpec(bf.shape, lambda i: (0, 0)),
    ]
    flops += 2 * M_run * wf.shape[0] * wf.shape[1]
    bytes_accessed += wf.size * 2 + bf.size * 4 + M_run * d_out * 4

    out = pl.pallas_call(
        _make_batch_mlp_kernel(len(blocks)),
        out_shape=jax.ShapeDtypeStruct((M_run, d_out), jnp.float32),
        grid=grid,
        in_specs=in_specs,
        out_specs=pl.BlockSpec((tile_m, d_out), lambda i: (i, 0)),
        compiler_params=pltpu.CompilerParams(
            dimension_semantics=("parallel",),
            vmem_limit_bytes=48 * 1024 * 1024,
        ),
        cost_estimate=pl.CostEstimate(
            flops=flops, transcendentals=0, bytes_accessed=bytes_accessed
        ),
    )(*operands)

    if padded:
        out = out[:M]
    return out.reshape(B, n, d_out)


# ---------------------------------------------------------------------------
# Parameter construction matching the PyTorch module defaults
# ---------------------------------------------------------------------------
def init_batch_mlp_params(key, input_size, output_size, num_layers=3, eps=1e-5):
    """kaiming_normal_ weights, default-uniform biases, fresh BatchNorm stats.

    Returns both the kernel params (each block's eval-mode BN affine folded
    into the NEXT layer, weights in bf16) and an unfolded f32 copy for the
    pure-JAX reference."""

    def linear(key, cin, cout):
        kw, kb = jax.random.split(key)
        std = math.sqrt(2.0 / cin)                     # kaiming_normal_, fan_in, relu gain
        w = std * jax.random.normal(kw, (cin, cout), dtype=jnp.float32)
        bound = 1.0 / math.sqrt(cin)                   # nn.Linear default bias init
        b = jax.random.uniform(kb, (cout,), minval=-bound, maxval=bound,
                               dtype=jnp.float32)
        return w, b

    sizes = [(input_size, output_size)] + [(output_size, output_size)] * (num_layers - 2)
    raw = []
    for cin, cout in sizes:
        key, sub = jax.random.split(key)
        w, b = linear(sub, cin, cout)
        # BatchNorm2d(cout) eval-mode affine with fresh running stats.
        gamma = jnp.ones((cout,), jnp.float32)
        beta = jnp.zeros((cout,), jnp.float32)
        run_mean = jnp.zeros((cout,), jnp.float32)
        run_var = jnp.ones((cout,), jnp.float32)
        scale = gamma / jnp.sqrt(run_var + eps)
        shift = beta - run_mean * scale
        raw.append((w, b, scale, shift))
    key, sub = jax.random.split(key)
    wf, bf = linear(sub, output_size, output_size)

    # Fold each block's BN affine (y = relu_out * scale + shift) into the NEXT
    # layer:  y @ W + b = relu_out @ (diag(scale) W) + (shift @ W + b).
    blocks = []
    prev_scale = prev_shift = None
    for w, b, scale, shift in raw:
        wk, bk = w, b
        if prev_scale is not None:
            bk = b + prev_shift @ w
            wk = prev_scale[:, None] * w
        blocks.append((wk.astype(jnp.bfloat16), bk.reshape(1, -1)))
        prev_scale, prev_shift = scale, shift
    bfk = bf + prev_shift @ wf
    wfk = prev_scale[:, None] * wf

    return {
        "blocks": blocks,
        "final": (wfk.astype(jnp.bfloat16), bfk.reshape(1, -1)),
        "ref": {"blocks": raw, "final": (wf, bf)},
    }


def batch_mlp_reference(x, ref_params):
    """Pure-JAX f32 reference: Linear -> ReLU -> eval BatchNorm per block, final Linear."""
    B, n, d_in = x.shape
    h = x.reshape(B * n, d_in)
    for w, b, scale, shift in ref_params["blocks"]:
        h = jnp.maximum(h @ w + b, 0.0)
        h = h * scale + shift                          # eval-mode BatchNorm2d
    wf, bf = ref_params["final"]
    out = h @ wf + bf
    return out.reshape(B, n, -1)


# ---------------------------------------------------------------------------
if __name__ == "__main__":
    key = jax.random.PRNGKey(0)
    key, kx, kp = jax.random.split(key, 3)

    # BatchMLP(input_size=32, output_size=128, num_layers=3) on x: (B=2, n=256, 32)
    B, n, input_size, output_size = 2, 256, 32, 128
    x = jax.random.normal(kx, (B, n, input_size), dtype=jnp.float32)

    params = init_batch_mlp_params(kp, input_size, output_size, num_layers=3)

    out = batch_mlp_forward(x, params)
    out = jax.block_until_ready(out)

    assert out.shape == (B, n, output_size), out.shape
    assert bool(jnp.all(jnp.isfinite(out)))

    # Numerical check vs. an unfolded f32 reference (bf16 matmuls -> loose tol).
    ref = batch_mlp_reference(x, params["ref"])
    assert bool(jnp.allclose(out, ref, rtol=5e-2, atol=5e-2)), (
        float(jnp.max(jnp.abs(out - ref))))

    print("KERNEL_OK")
</pallas_src>

<mosaic_0001>
module attributes {stable_mosaic.version = 11 : i64} {
  func.func @kernel(%arg0: i32, %arg1: memref<256x32xbf16, #tpu.memory_space<vmem>>, %arg2: memref<32x128xbf16, #tpu.memory_space<vmem>>, %arg3: memref<1x128xf32, #tpu.memory_space<vmem>>, %arg4: memref<128x128xbf16, #tpu.memory_space<vmem>>, %arg5: memref<1x128xf32, #tpu.memory_space<vmem>>, %arg6: memref<128x128xbf16, #tpu.memory_space<vmem>>, %arg7: memref<1x128xf32, #tpu.memory_space<vmem>>, %arg8: memref<256x128xf32, #tpu.memory_space<vmem>>) attributes {dimension_semantics = [#tpu.dimension_semantics<parallel>], iteration_bounds = array<i64: 2>, scalar_prefetch = 0 : i64, scratch_operands = 0 : i64, tpu.core_type = #tpu.core_type<tc>, window_params = [{transform_indices = @transform_0, window_bounds = array<i64: 256, 32>}, {pipeline_mode = #tpu.pipeline_mode<synchronous>, transform_indices = @transform_1, window_bounds = array<i64: 32, 128>}, {pipeline_mode = #tpu.pipeline_mode<synchronous>, transform_indices = @transform_2, window_bounds = array<i64: 1, 128>}, {pipeline_mode = #tpu.pipeline_mode<synchronous>, transform_indices = @transform_3, window_bounds = array<i64: 128, 128>}, {pipeline_mode = #tpu.pipeline_mode<synchronous>, transform_indices = @transform_4, window_bounds = array<i64: 1, 128>}, {pipeline_mode = #tpu.pipeline_mode<synchronous>, transform_indices = @transform_5, window_bounds = array<i64: 128, 128>}, {pipeline_mode = #tpu.pipeline_mode<synchronous>, transform_indices = @transform_6, window_bounds = array<i64: 1, 128>}, {transform_indices = @transform_7, window_bounds = array<i64: 256, 128>}]} {
    %c0 = arith.constant 0 : index
    %c0_0 = arith.constant 0 : index
    %0 = vector.load %arg1[%c0, %c0_0] : memref<256x32xbf16, #tpu.memory_space<vmem>>, vector<256x32xbf16>
    %c0_1 = arith.constant 0 : index
    %c0_2 = arith.constant 0 : index
    %1 = vector.load %arg2[%c0_1, %c0_2] : memref<32x128xbf16, #tpu.memory_space<vmem>>, vector<32x128xbf16>
    %cst = arith.constant dense<0.000000e+00> : vector<256x128xf32>
    %2 = tpu.matmul %0, %1, %cst {dimension_numbers = #tpu.dot_dimension_numbers<[1], [0], [0], [1], [0, 0, 1, 1], [], []>} : vector<256x32xbf16>, vector<32x128xbf16>, vector<256x128xf32> -> vector<256x128xf32>
    %c0_3 = arith.constant 0 : index
    %c0_4 = arith.constant 0 : index
    %3 = vector.load %arg3[%c0_3, %c0_4] : memref<1x128xf32, #tpu.memory_space<vmem>>, vector<1x128xf32>
    %4 = vector.broadcast %3 : vector<1x128xf32> to vector<256x128xf32>
    %5 = arith.addf %2, %4 : vector<256x128xf32>
    %cst_5 = arith.constant 0.000000e+00 : f32
    %6 = vector.broadcast %cst_5 : f32 to vector<256x128xf32>
    %7 = arith.maximumf %5, %6 : vector<256x128xf32>
    %8 = arith.truncf %7 : vector<256x128xf32> to vector<256x128xbf16>
    %c0_6 = arith.constant 0 : index
    %c0_7 = arith.constant 0 : index
    %9 = vector.load %arg4[%c0_6, %c0_7] : memref<128x128xbf16, #tpu.memory_space<vmem>>, vector<128x128xbf16>
    %cst_8 = arith.constant dense<0.000000e+00> : vector<256x128xf32>
    %10 = tpu.matmul %8, %9, %cst_8 {dimension_numbers = #tpu.dot_dimension_numbers<[1], [0], [0], [1], [0, 0, 1, 1], [], []>} : vector<256x128xbf16>, vector<128x128xbf16>, vector<256x128xf32> -> vector<256x128xf32>
    %c0_9 = arith.constant 0 : index
    %c0_10 = arith.constant 0 : index
    %11 = vector.load %arg5[%c0_9, %c0_10] : memref<1x128xf32, #tpu.memory_space<vmem>>, vector<1x128xf32>
    %12 = vector.broadcast %11 : vector<1x128xf32> to vector<256x128xf32>
    %13 = arith.addf %10, %12 : vector<256x128xf32>
    %cst_11 = arith.constant 0.000000e+00 : f32
    %14 = vector.broadcast %cst_11 : f32 to vector<256x128xf32>
    %15 = arith.maximumf %13, %14 : vector<256x128xf32>
    %16 = arith.truncf %15 : vector<256x128xf32> to vector<256x128xbf16>
    %c0_12 = arith.constant 0 : index
    %c0_13 = arith.constant 0 : index
    %17 = vector.load %arg6[%c0_12, %c0_13] : memref<128x128xbf16, #tpu.memory_space<vmem>>, vector<128x128xbf16>
    %cst_14 = arith.constant dense<0.000000e+00> : vector<256x128xf32>
    %18 = tpu.matmul %16, %17, %cst_14 {dimension_numbers = #tpu.dot_dimension_numbers<[1], [0], [0], [1], [0, 0, 1, 1], [], []>} : vector<256x128xbf16>, vector<128x128xbf16>, vector<256x128xf32> -> vector<256x128xf32>
    %c0_15 = arith.constant 0 : index
    %c0_16 = arith.constant 0 : index
    %19 = vector.load %arg7[%c0_15, %c0_16] : memref<1x128xf32, #tpu.memory_space<vmem>>, vector<1x128xf32>
    %20 = vector.broadcast %19 : vector<1x128xf32> to vector<256x128xf32>
    %21 = arith.addf %18, %20 : vector<256x128xf32>
    %c0_17 = arith.constant 0 : index
    %c0_18 = arith.constant 0 : index
    %22 = vector.load %arg8[%c0_17, %c0_18] : memref<256x128xf32, #tpu.memory_space<vmem>>, vector<256x128xf32>
    tpu.vector_store %arg8[%c0_17, %c0_18], %21 {strides = array<i32>} : memref<256x128xf32, #tpu.memory_space<vmem>>, vector<256x128xf32>,
    return
  }
  func.func @transform_0(%arg0: i32) -> (i32, i32) {
    %c0_i32 = arith.constant 0 : i32
    %c0_i32_0 = arith.constant 0 : i32
    return %arg0, %c0_i32 : i32, i32
  }
  func.func @transform_1(%arg0: i32) -> (i32, i32) {
    %c0_i32 = arith.constant 0 : i32
    %c0_i32_0 = arith.constant 0 : i32
    %c0_i32_1 = arith.constant 0 : i32
    return %c0_i32, %c0_i32_0 : i32, i32
  }
  func.func @transform_2(%arg0: i32) -> (i32, i32) {
    %c0_i32 = arith.constant 0 : i32
    %c0_i32_0 = arith.constant 0 : i32
    %c0_i32_1 = arith.constant 0 : i32
    return %c0_i32, %c0_i32_0 : i32, i32
  }
  func.func @transform_3(%arg0: i32) -> (i32, i32) {
    %c0_i32 = arith.constant 0 : i32
    %c0_i32_0 = arith.constant 0 : i32
    %c0_i32_1 = arith.constant 0 : i32
    return %c0_i32, %c0_i32_0 : i32, i32
  }
  func.func @transform_4(%arg0: i32) -> (i32, i32) {
    %c0_i32 = arith.constant 0 : i32
    %c0_i32_0 = arith.constant 0 : i32
    %c0_i32_1 = arith.constant 0 : i32
    return %c0_i32, %c0_i32_0 : i32, i32
  }
  func.func @transform_5(%arg0: i32) -> (i32, i32) {
    %c0_i32 = arith.constant 0 : i32
    %c0_i32_0 = arith.constant 0 : i32
    %c0_i32_1 = arith.constant 0 : i32
    return %c0_i32, %c0_i32_0 : i32, i32
  }
  func.func @transform_6(%arg0: i32) -> (i32, i32) {
    %c0_i32 = arith.constant 0 : i32
    %c0_i32_0 = arith.constant 0 : i32
    %c0_i32_1 = arith.constant 0 : i32
    return %c0_i32, %c0_i32_0 : i32, i32
  }
  func.func @transform_7(%arg0: i32) -> (i32, i32) {
    %c0_i32 = arith.constant 0 : i32
    %c0_i32_0 = arith.constant 0 : i32
    return %arg0, %c0_i32 : i32, i32
  }
}

</mosaic_0001>

<bundles_post_ra>
// kernel: tpu_custom_call.1
= control target key start
LH: loop header
LB: loop body
LE: loop exit
PB: predicated region body
PF: predicated region fallthrough
CT: control target
= control target key end

     0   :  { %12 = vsyncpa [#allocation3], 0  ;;  %s1760_s0 = inlined_call_operand.vmem [shape: bf16[512,32], index: 0, kind: input, shape index: {}]   ;;  %s1761_s1 = inlined_call_operand.vmem [shape: bf16[32,128], index: 1, kind: input, shape index: {}]   ;;  %s1762_s2 = inlined_call_operand.vmem [shape: f32[1,128], index: 2, kind: input, shape index: {}]   ;;  %s1763_s3 = inlined_call_operand.vmem [shape: bf16[128,128], index: 3, kind: input, shape index: {}]   ;;  %s1764_s4 = inlined_call_operand.vmem [shape: f32[1,128], index: 4, kind: input, shape index: {}]   ;;  %s1765_s5 = inlined_call_operand.vmem [shape: bf16[128,128], index: 5, kind: input, shape index: {}]   ;;  %s1766_s6 = inlined_call_operand.vmem [shape: f32[1,128], index: 6, kind: input, shape index: {}]   ;;  %s1767_s7 = inlined_call_operand.hbm [shape: f32[512,128], index: 7, kind: output, shape index: {}]  }
   0x1   :  { %14 = vsyncpa [#allocation3 + $0x1], 0  ;;  %s1438_s24 = smov 0   ;;  %s1440_s25 = smov 0  }
   0x2   :  { %s1442_s26 = smov 0   ;;  %s1444_s27 = smov 0  }
   0x3 LB: > { %s1459_s28 = sadd.s32 4294967295, %s1394_s27   ;;  %s1071_s29 = sadd.s32 4294967294, %s1394_s27   ;;  %s1394_s27 = sphi %s1444_s27, %s1773_s27   ;;  %s1390_s26 = sphi %s1442_s26, %s1772_s26   ;;  %s1386_s25 = sphi %s1440_s25, %s1771_s25   ;;  %s1382_s24 = sphi %s1438_s24, %s1770_s24  }
   0x4   : > { %s1463_s30 = sadd.s32 1, %s1394_s27   ;;  %s179_s8 = sadd.s32 1, %s1390_s26 }
   0x5   : > { %s176_s9 = ssub.s32 %s1394_s27, %s1463_s30  ;;  %p189_p0 = scmp.ne.s32.totalorder %s1390_s26, %s1386_s25 }
   0x6   : > { %p177_p1 = scmp.eq.s32.totalorder %s176_s9, 0  ;;  %p190_p2 = scmp.eq.s32.totalorder %s1459_s28, 1 }
   0x7   : > { %p195_p3 = scmp.ne.s32.totalorder %s1386_s25, %s1382_s24  ;;  %p196_p4 = scmp.eq.s32.totalorder %s1071_s29, 1 }
   0x8   : > { %s1474_s10 = scalar_select %p177_p1, %s1390_s26, %s179_s8  }
   0x9   : > { %p1476_p5 = por %p190_p2, %p189_p0  ;;  %p1480_p6 = por %p196_p4, %p195_p3 }
   0xa   : > { %p1074_p7 = scmp.ge.s32.totalorder %s1394_s27, 1  ;;  %p241_p8 = scmp.lt.s32.totalorder %s1394_s27, 3 }
   0xc   : > { %p242_p9 = pnand %p1074_p7, %p241_p8 }
   0xd   : > { %s1076_s15 = sshll.u32 (!%p242_p9), %s1459_s28, 5  ;;  %s270_s16 = sand.u32 (!%p242_p9), 1, %s1386_s25  }
   0xe   : > { %245 = sbr.rel (%p242_p9) target bundleno = 699 (0x2bb), region = 48  ;;  %p274_p10 = scmp.lt.s32.totalorder (!%p242_p9), %s1076_s15, 63 }
   0xf   : > { %s1075_s17 = sshll.u32 (!%p242_p9), %s270_s16, 8  ;;  %s1269_s22 = sshll.u32 (!%p242_p9), %s1459_s28, 8 }
  0x10   : > { %s1647_s20 = scalar_lea.vmem (!%p242_p9), [#allocation2], %s1075_s17  ;;  %s1005_s8 = scalar_lea.hbm (!%p242_p9), %s1767_s7, %s1269_s22 }
  0x11   : > { %s1006_s9 = sshll.u32 (!%p242_p9), %s1647_s20, 4  ;;  %s1008_s13 = sshll.u32 (!%p242_p9), %s1005_s8, 4  ;;  %s1007_s9 = int_to_ptr.vmem [resolvable:$true] %s1006_s9  ;;  %s1009_s13 = int_to_ptr.hbm [resolvable:$true] %s1008_s13 }
  0x12   : > { %s994_s14 = scalar_lea.sflag (!%p242_p9), [#allocation3], %s270_s16  ;;  %s1346_s28 = sshra.s32 (!%p242_p9), %s1009_s13, 4  ;;  %s1347_s28 = int_to_ptr.hbm [resolvable:$true] %s1346_s28 }
  0x13   : > { %v1252_v0 = vld [vmem:[%s1761_s1 + $0x8] sm:$0xff]  ;;  %v1251_v1 = vld [vmem:[%s1761_s1] sm:$0xff]  ;;  %s1775_s15 = smov (!%p274_p10, %s1076_s15), 63  ;;  %vm413_vm0 = vcmask 261120   ;;  %v1260_v7 = vld [vmem:[%s1763_s3 + $0x38] sm:$0xff]  ;;  %p1353_p0 = scmp.lt.s32.totalorder %s1347_s28, %s1767_s7 }
  0x14   : > { %468 = vmatpush.bf16.msra.mxu0 %v1252_v0  ;;  %1270 = vmatpush.bf16.msra.mxu3 %v1252_v0  ;;  %s1077_s18 = sshll.u32 %s1775_s15, 2  ;;  %v1259_v9 = vld [vmem:[%s1763_s3 + $0x30] sm:$0xff]  ;;  %v1258_v10 = vld [vmem:[%s1763_s3 + $0x28] sm:$0xff]  ;;  %v1257_v11 = vld [vmem:[%s1763_s3 + $0x20] sm:$0xff] }
  0x15   : > { %s1496_s21 = scalar_lea.vmem %s1760_s0, %s1077_s18  ;;  %667 = vmatpush.bf16.msra.mxu1 %v1260_v7  ;;  %v1256_v12 = vld [vmem:[%s1763_s3 + $0x18] sm:$0xff]  ;;  %v1255_v14 = vld [vmem:[%s1763_s3 + $0x10] sm:$0xff]  ;;  %v1254_v15 = vld [vmem:[%s1763_s3 + $0x8] sm:$0xff]  ;;  %s1352_s18 = scalar_lea.hbm %s1767_s7, 512 }
  0x16   : > { %v1235_v2 = vld [vmem:[%s1496_s21] sm:$0xff]  ;;  %v1236_v3 = vld [vmem:[%s1496_s21 + $0x8] sm:$0xff]  ;;  %v1237_v4 = vld [vmem:[%s1496_s21 + $0x10] sm:$0xff] }
  0x17   : > { %v1238_v5 = vld [vmem:[%s1496_s21 + $0x18] sm:$0xff]  ;;  %v1239_v6 = vld [vmem:[%s1496_s21 + $0x20] sm:$0xff]  ;;  %v1240_v8 = vld [vmem:[%s1496_s21 + $0x28] sm:$0xff] }
  0x18   : > { %469 = vmatpush.bf16.msra.mxu0 %v1251_v1  ;;  %1271 = vmatpush.bf16.msra.mxu3 %v1251_v1  ;;  %v1241_v13 = vld [vmem:[%s1496_s21 + $0x30] sm:$0xff]  ;;  %v1253_v16 = vld [vmem:[%s1763_s3] sm:$0xff]  ;;  %v1242_v17 = vld [vmem:[%s1496_s21 + $0x38] sm:$0xff] }
  0x19   : > { %668 = vmatpush.bf16.msra.mxu1 %v1259_v9  ;;  %v1243_v18 = vld [vmem:[%s1496_s21 + $0x40] sm:$0xff]  ;;  %v1244_v27 = vld [vmem:[%s1496_s21 + $0x48] sm:$0xff]  ;;  %v1245_v35 = vld [vmem:[%s1496_s21 + $0x50] sm:$0xff] }
  0x1a   : > { %v1542_v20 = vld [vmem:[%s1762_s2] ss:$0 sm:$0xff]  ;;  %v1248_v37 = vld [vmem:[%s1496_s21 + $0x68] sm:$0xff]  ;;  %v1246_v44 = vld [vmem:[%s1496_s21 + $0x58] sm:$0xff] }
  0x1b   : > { %1150 = vmatmul.msk.bf16.vlgmr.msra.gmra.mxu0 %vm413_vm0, %v1235_v2  ;;  %1163 = vmatmul.msk.bf16.vlgmr.msra.gmra.mxu3 %vm413_vm0, %v1248_v37  ;;  %v1249_v46 = vld [vmem:[%s1496_s21 + $0x70] sm:$0xff]  ;;  %v1247_v53 = vld [vmem:[%s1496_s21 + $0x60] sm:$0xff]  ;;  %v1250_v55 = vld [vmem:[%s1496_s21 + $0x78] sm:$0xff]  ;;  %s1348_s21 = scalar_lea.hbm %s1347_s28, 256 }
  0x1c   : > { %1272 = vmatpush.bf16.msrb.mxu3 %v1260_v7  ;;  %v1268_v2 = vld [vmem:[%s1765_s5 + $0x38] sm:$0xff]  ;;  %p1349_p11 = scmp.ne.s32.totalorder %s1347_s28, %s1348_s21  ;;  %p1354_p1 = scmp.lt.s32.totalorder %s1352_s18, %s1348_s21 }
  0x1d   : > { %669 = vmatpush.bf16.msra.mxu1 %v1258_v10  ;;  %872 = vmatpush.bf16.msra.mxu2 %v1268_v2 }
  0x1e   : > { %p1350_p12 = pnand %p1349_p11, %p1476_p5  ;;  %p1355_p2 = por %p1354_p1, %p1353_p0 }
  0x20   : > { %1273 = vmatpush.bf16.msrb.mxu3 %v1259_v9  ;;  %v1265_v9 = vld [vmem:[%s1765_s5 + $0x20] sm:$0xff]  ;;  %p1351_p13 = pneg %p1350_p12 }
  0x21   : > { %670 = vmatpush.bf16.msra.mxu1 %v1257_v11 }
  0x22   : > { %p1356_p3 = pnand %p1355_p2, %p1351_p13 }
  0x24   : > { %1274 = vmatpush.bf16.msrb.mxu3 %v1258_v10 }
  0x25   : > { %671 = vmatpush.bf16.msra.mxu1 %v1256_v12 }
  0x28   : > { %1275 = vmatpush.bf16.msrb.mxu3 %v1257_v11 }
  0x29   : > { %672 = vmatpush.bf16.msra.mxu1 %v1255_v14 }
  0x2b   : > { %1151 = vmatmul.msk.bf16.gmra.mxu0 %vm413_vm0, %v1236_v3  ;;  %1164 = vmatmul.msk.bf16.gmra.mxu3 %vm413_vm0, %v1249_v46 }
  0x2c   : > { %1276 = vmatpush.bf16.msrb.mxu3 %v1256_v12 }
  0x2d   : > { %673 = vmatpush.bf16.msra.mxu1 %v1254_v15 }
  0x30   : > { %1277 = vmatpush.bf16.msrb.mxu3 %v1255_v14 }
  0x31   : > { %674 = vmatpush.bf16.msra.mxu1 %v1253_v16 }
  0x34   : > { %1278 = vmatpush.bf16.msrb.mxu3 %v1254_v15 }
  0x38   : > { %1279 = vmatpush.bf16.msrb.mxu3 %v1253_v16 }
  0x3b   : > { %1152 = vmatmul.msk.bf16.gmra.mxu0 %vm413_vm0, %v1237_v4  ;;  %1165 = vmatmul.msk.bf16.gmra.mxu3 %vm413_vm0, %v1250_v55 }
  0x3c   : > { %1280 = vmatpush.bf16.msra.mxu3 %v1268_v2 }
  0x4b   : > { %1153 = vmatmul.msk.bf16.gmra.mxu0 %vm413_vm0, %v1238_v5 }
  0x5b   : > { %1154 = vmatmul.msk.bf16.gmra.mxu0 %vm413_vm0, %v1239_v6  ;;  %v1267_v6 = vld [vmem:[%s1765_s5 + $0x30] sm:$0xff] }
  0x5c   : > { %873 = vmatpush.bf16.msra.mxu2 %v1267_v6  ;;  %1281 = vmatpush.bf16.msra.mxu3 %v1267_v6 }
  0x6b   : > { %1155 = vmatmul.msk.bf16.gmra.mxu0 %vm413_vm0, %v1240_v8  ;;  %v1266_v8 = vld [vmem:[%s1765_s5 + $0x28] sm:$0xff] }
  0x6c   : > { %874 = vmatpush.bf16.msra.mxu2 %v1266_v8  ;;  %1282 = vmatpush.bf16.msra.mxu3 %v1266_v8 }
  0x70   : > { %875 = vmatpush.bf16.msra.mxu2 %v1265_v9  ;;  %1283 = vmatpush.bf16.msra.mxu3 %v1265_v9 }
  0x7b   : > { %1156 = vmatmul.msk.bf16.gmra.mxu0 %vm413_vm0, %v1241_v13  ;;  %v1264_v13 = vld [vmem:[%s1765_s5 + $0x18] sm:$0xff] }
  0x7c   : > { %876 = vmatpush.bf16.msra.mxu2 %v1264_v13  ;;  %1284 = vmatpush.bf16.msra.mxu3 %v1264_v13 }
  0x8b   : > { %1157 = vmatmul.msk.bf16.gmra.mxu0 %vm413_vm0, %v1242_v17  ;;  %v1263_v17 = vld [vmem:[%s1765_s5 + $0x10] sm:$0xff] }
  0x8c   : > { %877 = vmatpush.bf16.msra.mxu2 %v1263_v17  ;;  %1285 = vmatpush.bf16.msra.mxu3 %v1263_v17 }
  0x98   : > { %v471_v19 = vpop.f32.mrf.mxu0 }
  0x99   : > { %v472_v21 = vadd.f32 %v1542_v20, %v471_v19  ;;  %v1262_v19 = vld [vmem:[%s1765_s5 + $0x8] sm:$0xff] }
  0x9a   : > { %878 = vmatpush.bf16.msra.mxu2 %v1262_v19  ;;  %1286 = vmatpush.bf16.msra.mxu3 %v1262_v19 }
  0x9b   : > { %1158 = vmatmul.msk.bf16.gmra.mxu0 %vm413_vm0, %v1243_v18  ;;  %v551_v24 = vmax.f32 %v472_v21, 0.0  ;;  %v1261_v21 = vld [vmem:[%s1765_s5] sm:$0xff] }
  0x9e   : > { %879 = vmatpush.bf16.msra.mxu2 %v1261_v21  ;;  %1287 = vmatpush.bf16.msra.mxu3 %v1261_v21 }
  0xa0   : > { %v473_v22 = vpop.f32.mrf.mxu0 }
  0xa1   : > { %v474_v23 = vadd.f32 %v1542_v20, %v473_v22 }
  0xa3   : > { %v552_v25 = vmax.f32 %v474_v23, 0.0 }
  0xa5   : > { %v583_v26 = vpack.c.bf16 %v552_v25, %v551_v24 }
  0xa7   : > { %675 = vmatmul.bf16.vlgmr.msra.gmra.mxu1 %v583_v26 }
  0xa8   : > { %v476_v28 = vpop.f32.mrf.mxu0 }
  0xa9   : > { %v477_v29 = vadd.f32 %v1542_v20, %v476_v28 }
  0xab   : > { %1159 = vmatmul.msk.bf16.gmra.mxu0 %vm413_vm0, %v1244_v27  ;;  %v553_v32 = vmax.f32 %v477_v29, 0.0 }
  0xb0   : > { %v478_v30 = vpop.f32.mrf.mxu0 }
  0xb1   : > { %v479_v31 = vadd.f32 %v1542_v20, %v478_v30 }
  0xb3   : > { %v554_v33 = vmax.f32 %v479_v31, 0.0 }
  0xb5   : > { %v584_v34 = vpack.c.bf16 %v554_v33, %v553_v32 }
  0xb7   : > { %680 = vmatmul.bf16.gmra.mxu1 %v584_v34 }
  0xb8   : > { %v481_v36 = vpop.f32.mrf.mxu0 }
  0xb9   : > { %v482_v38 = vadd.f32 %v1542_v20, %v481_v36  ;;  %v1604_v36 = vld [vmem:[%s1764_s4] ss:$0 sm:$0xff] }
  0xbb   : > { %1160 = vmatmul.msk.bf16.gmra.mxu0 %vm413_vm0, %v1245_v35  ;;  %v555_v41 = vmax.f32 %v482_v38, 0.0 }
  0xc0   : > { %v483_v39 = vpop.f32.mrf.mxu0 }
  0xc1   : > { %v484_v40 = vadd.f32 %v1542_v20, %v483_v39 }
  0xc3   : > { %v556_v42 = vmax.f32 %v484_v40, 0.0 }
  0xc5   : > { %v585_v43 = vpack.c.bf16 %v556_v42, %v555_v41 }
  0xc7   : > { %685 = vmatmul.bf16.gmra.mxu1 %v585_v43 }
  0xc8   : > { %v486_v45 = vpop.f32.mrf.mxu0 }
  0xc9   : > { %v487_v47 = vadd.f32 %v1542_v20, %v486_v45 }
  0xcb   : > { %1161 = vmatmul.msk.bf16.gmra.mxu0 %vm413_vm0, %v1246_v44  ;;  %v557_v50 = vmax.f32 %v487_v47, 0.0 }
  0xd0   : > { %v488_v48 = vpop.f32.mrf.mxu0 }
  0xd1   : > { %v489_v49 = vadd.f32 %v1542_v20, %v488_v48 }
  0xd3   : > { %v558_v51 = vmax.f32 %v489_v49, 0.0 }
  0xd5   : > { %v586_v52 = vpack.c.bf16 %v558_v51, %v557_v50 }
  0xd7   : > { %690 = vmatmul.bf16.gmra.mxu1 %v586_v52 }
  0xd8   : > { %v491_v54 = vpop.f32.mrf.mxu0 }
  0xd9   : > { %v492_v56 = vadd.f32 %v1542_v20, %v491_v54 }
  0xdb   : > { %1162 = vmatmul.msk.bf16.gmra.mxu0 %vm413_vm0, %v1247_v53  ;;  %v559_v59 = vmax.f32 %v492_v56, 0.0 }
  0xe0   : > { %v493_v57 = vpop.f32.mrf.mxu0 }
  0xe1   : > { %v494_v58 = vadd.f32 %v1542_v20, %v493_v57 }
  0xe3   : > { %v560_v60 = vmax.f32 %v494_v58, 0.0 }
  0xe5   : > { %v587_v61 = vpack.c.bf16 %v560_v60, %v559_v59 }
  0xe7   : > { %695 = vmatmul.bf16.gmra.mxu1 %v587_v61 }
  0xe8   : > { %v496_v62 = vpop.f32.mrf.mxu0 }
  0xe9   : > { %v497_v63 = vadd.f32 %v1542_v20, %v496_v62 }
  0xeb   : > { %v561_v3 = vmax.f32 %v497_v63, 0.0 }
  0xf0   : > { %v498_v0 = vpop.f32.mrf.mxu0 }
  0xf1   : > { %v499_v1 = vadd.f32 %v1542_v20, %v498_v0 }
  0xf3   : > { %v562_v4 = vmax.f32 %v499_v1, 0.0 }
  0xf5   : > { %v588_v5 = vpack.c.bf16 %v562_v4, %v561_v3 }
  0xf7   : > { %700 = vmatmul.bf16.gmra.mxu1 %v588_v5 }
  0xf8   : > { %v501_v7 = vpop.f32.mrf.mxu0 }
  0xf9   : > { %v502_v10 = vadd.f32 %v1542_v20, %v501_v7 }
  0xfb   : > { %v563_v14 = vmax.f32 %v502_v10, 0.0 }
 0x100   : > { %v503_v11 = vpop.f32.mrf.mxu0 }
 0x101   : > { %v504_v12 = vadd.f32 %v1542_v20, %v503_v11 }
 0x103   : > { %v564_v15 = vmax.f32 %v504_v12, 0.0 }
 0x105   : > { %v589_v16 = vpack.c.bf16 %v564_v15, %v563_v14 }
 0x107   : > { %705 = vmatmul.bf16.gmra.mxu1 %v589_v16  ;;  %v536_v16 = vpop.f32.mrf.mxu3 }
 0x108   : > { %v506_v18 = vpop.f32.mrf.mxu0 }
 0x109   : > { %v507_v22 = vadd.f32 %v1542_v20, %v506_v18 }
 0x10b   : > { %v565_v25 = vmax.f32 %v507_v22, 0.0 }
 0x110   : > { %v508_v23 = vpop.f32.mrf.mxu0 }
 0x111   : > { %v509_v24 = vadd.f32 %v1542_v20, %v508_v23 }
 0x113   : > { %v566_v26 = vmax.f32 %v509_v24, 0.0 }
 0x115   : > { %v590_v27 = vpack.c.bf16 %v566_v26, %v565_v25 }
 0x117   : > { %710 = vmatmul.bf16.gmra.mxu1 %v590_v27  ;;  %v538_v27 = vpop.f32.mrf.mxu3 }
 0x118   : > { %v511_v28 = vpop.f32.mrf.mxu0 }
 0x119   : > { %v512_v29 = vadd.f32 %v1542_v20, %v511_v28 }
 0x11b   : > { %v567_v32 = vmax.f32 %v512_v29, 0.0 }
 0x120   : > { %v513_v30 = vpop.f32.mrf.mxu0 }
 0x121   : > { %v514_v31 = vadd.f32 %v1542_v20, %v513_v30 }
 0x123   : > { %v568_v33 = vmax.f32 %v514_v31, 0.0 }
 0x124   : > { %v676_v34 = vpop.f32.mrf.mxu1 }
 0x125   : > { %v591_v35 = vpack.c.bf16 %v568_v33, %v567_v32  ;;  %v677_v38 = vadd.f32 %v1604_v36, %v676_v34  ;;  %v541_v34 = vpop.f32.mrf.mxu3 }
 0x127   : > { %715 = vmatmul.bf16.gmra.mxu1 %v591_v35  ;;  %v756_v41 = vmax.f32 %v677_v38, 0.0  ;;  %v537_v35 = vadd.f32 %v1542_v20, %v536_v16 }
 0x128   : > { %v516_v37 = vpop.f32.mrf.mxu0 }
 0x129   : > { %v517_v42 = vadd.f32 %v1542_v20, %v516_v37  ;;  %v539_v37 = vadd.f32 %v1542_v20, %v538_v27 }
 0x12b   : > { %v569_v47 = vmax.f32 %v517_v42, 0.0  ;;  %v578_v42 = vmax.f32 %v539_v37, 0.0 }
 0x12c   : > { %v678_v39 = vpop.f32.mrf.mxu1 }
 0x12d   : > { %v679_v40 = vadd.f32 %v1604_v36, %v678_v39 }
 0x12f   : > { %v757_v43 = vmax.f32 %v679_v40, 0.0 }
 0x130   : > { %v518_v44 = vpop.f32.mrf.mxu0 }
 0x131   : > { %v519_v45 = vadd.f32 %v1542_v20, %v518_v44  ;;  %v788_v46 = vpack.c.bf16 %v757_v43, %v756_v41  ;;  %v577_v41 = vmax.f32 %v537_v35, 0.0 }
 0x133   : > { %v570_v48 = vmax.f32 %v519_v45, 0.0  ;;  %880 = vmatmul.bf16.vlgmr.msra.gmra.mxu2 %v788_v46  ;;  %v596_v45 = vpack.c.bf16 %v578_v42, %v577_v41  ;;  %v543_v46 = vpop.f32.mrf.mxu3 }
 0x134   : > { %v681_v49 = vpop.f32.mrf.mxu1 }
 0x135   : > { %v592_v50 = vpack.c.bf16 %v570_v48, %v569_v47  ;;  %v682_v52 = vadd.f32 %v1604_v36, %v681_v49  ;;  %v542_v49 = vadd.f32 %v1542_v20, %v541_v34 }
 0x137   : > { %720 = vmatmul.bf16.gmra.mxu1 %v592_v50  ;;  %v758_v55 = vmax.f32 %v682_v52, 0.0  ;;  %v544_v50 = vadd.f32 %v1542_v20, %v543_v46 }
 0x138   : > { %v521_v51 = vpop.f32.mrf.mxu0 }
 0x139   : > { %v522_v56 = vadd.f32 %v1542_v20, %v521_v51 }
 0x13b   : > { %v571_v61 = vmax.f32 %v522_v56, 0.0  ;;  %v580_v56 = vmax.f32 %v544_v50, 0.0 }
 0x13c   : > { %v683_v53 = vpop.f32.mrf.mxu1 }
 0x13d   : > { %v684_v54 = vadd.f32 %v1604_v36, %v683_v53 }
 0x13f   : > { %v759_v57 = vmax.f32 %v684_v54, 0.0  ;;  %v546_v54 = vpop.f32.mrf.mxu3 }
 0x140   : > { %v523_v58 = vpop.f32.mrf.mxu0 }
 0x141   : > { %v524_v59 = vadd.f32 %v1542_v20, %v523_v58  ;;  %v789_v60 = vpack.c.bf16 %v759_v57, %v758_v55  ;;  %v579_v55 = vmax.f32 %v542_v49, 0.0 }
 0x143   : > { %v572_v62 = vmax.f32 %v524_v59, 0.0  ;;  %885 = vmatmul.bf16.gmra.mxu2 %v789_v60  ;;  %v597_v59 = vpack.c.bf16 %v580_v56, %v579_v55 }
 0x144   : > { %v686_v63 = vpop.f32.mrf.mxu1 }
 0x145   : > { %v593_v0 = vpack.c.bf16 %v572_v62, %v571_v61  ;;  %v687_v2 = vadd.f32 %v1604_v36, %v686_v63  ;;  %v547_v63 = vadd.f32 %v1542_v20, %v546_v54 }
 0x147   : > { %725 = vmatmul.bf16.gmra.mxu1 %v593_v0  ;;  %v760_v5 = vmax.f32 %v687_v2, 0.0  ;;  %v548_v60 = vpop.f32.mrf.mxu3 }
 0x148   : > { %v526_v1 = vpop.f32.mrf.mxu0  ;;  %v549_v0 = vadd.f32 %v1542_v20, %v548_v60 }
 0x149   : > { %v527_v6 = vadd.f32 %v1542_v20, %v526_v1 }
 0x14b   : > { %v573_v11 = vmax.f32 %v527_v6, 0.0 }
 0x14c   : > { %v688_v3 = vpop.f32.mrf.mxu1 }
 0x14d   : > { %v689_v4 = vadd.f32 %v1604_v36, %v688_v3 }
 0x14f   : > { %v761_v7 = vmax.f32 %v689_v4, 0.0  ;;  %v581_v4 = vmax.f32 %v547_v63, 0.0 }
 0x150   : > { %v528_v8 = vpop.f32.mrf.mxu0 }
 0x151   : > { %v529_v9 = vadd.f32 %v1542_v20, %v528_v8  ;;  %v790_v10 = vpack.c.bf16 %v761_v7, %v760_v5  ;;  %v582_v5 = vmax.f32 %v549_v0, 0.0 }
 0x153   : > { %v574_v12 = vmax.f32 %v529_v9, 0.0  ;;  %890 = vmatmul.bf16.gmra.mxu2 %v790_v10  ;;  %v598_v8 = vpack.c.bf16 %v582_v5, %v581_v4 }
 0x154   : > { %v691_v13 = vpop.f32.mrf.mxu1 }
 0x155   : > { %v594_v14 = vpack.c.bf16 %v574_v12, %v573_v11  ;;  %v692_v17 = vadd.f32 %v1604_v36, %v691_v13 }
 0x157   : > { %730 = vmatmul.bf16.gmra.mxu1 %v594_v14  ;;  %v762_v21 = vmax.f32 %v692_v17, 0.0 }
 0x158   : > { %v531_v15 = vpop.f32.mrf.mxu0 }
 0x159   : > { %v532_v22 = vadd.f32 %v1542_v20, %v531_v15 }
 0x15b   : > { %v575_v28 = vmax.f32 %v532_v22, 0.0  ;;  %v1644_v22 = vld [vmem:[%s1766_s6] ss:$0 sm:$0xff] }
 0x15c   : > { %v693_v18 = vpop.f32.mrf.mxu1 }
 0x15d   : > { %v694_v19 = vadd.f32 %v1604_v36, %v693_v18 }
 0x15f   : > { %v763_v23 = vmax.f32 %v694_v19, 0.0 }
 0x160   : > { %v533_v24 = vpop.f32.mrf.mxu0 }
 0x161   : > { %v534_v25 = vadd.f32 %v1542_v20, %v533_v24  ;;  %v791_v26 = vpack.c.bf16 %v763_v23, %v762_v21 }
 0x163   : > { %v576_v29 = vmax.f32 %v534_v25, 0.0  ;;  %895 = vmatmul.bf16.gmra.mxu2 %v791_v26 }
 0x164   : > { %v696_v30 = vpop.f32.mrf.mxu1 }
 0x165   : > { %v595_v31 = vpack.c.bf16 %v576_v29, %v575_v28  ;;  %v697_v32 = vadd.f32 %v1604_v36, %v696_v30 }
 0x167   : > { %735 = vmatmul.bf16.vlgmr.msrb.gmra.mxu3 %v595_v31  ;;  %v764_v39 = vmax.f32 %v697_v32, 0.0 }
 0x16c   : > { %v698_v33 = vpop.f32.mrf.mxu1 }
 0x16d   : > { %v699_v38 = vadd.f32 %v1604_v36, %v698_v33 }
 0x16f   : > { %v765_v40 = vmax.f32 %v699_v38, 0.0 }
 0x171   : > { %v792_v43 = vpack.c.bf16 %v765_v40, %v764_v39 }
 0x173   : > { %900 = vmatmul.bf16.gmra.mxu2 %v792_v43 }
 0x174   : > { %v701_v44 = vpop.f32.mrf.mxu1 }
 0x175   : > { %v702_v47 = vadd.f32 %v1604_v36, %v701_v44 }
 0x177   : > { %740 = vmatmul.bf16.gmra.mxu3 %v596_v45  ;;  %v766_v52 = vmax.f32 %v702_v47, 0.0 }
 0x17c   : > { %v703_v48 = vpop.f32.mrf.mxu1 }
 0x17d   : > { %v704_v51 = vadd.f32 %v1604_v36, %v703_v48 }
 0x17f   : > { %v767_v53 = vmax.f32 %v704_v51, 0.0 }
 0x181   : > { %v793_v57 = vpack.c.bf16 %v767_v53, %v766_v52 }
 0x183   : > { %905 = vmatmul.bf16.gmra.mxu2 %v793_v57 }
 0x184   : > { %v706_v58 = vpop.f32.mrf.mxu1 }
 0x185   : > { %v707_v61 = vadd.f32 %v1604_v36, %v706_v58 }
 0x187   : > { %745 = vmatmul.bf16.gmra.mxu3 %v597_v59  ;;  %v768_v2 = vmax.f32 %v707_v61, 0.0 }
 0x18c   : > { %v708_v62 = vpop.f32.mrf.mxu1 }
 0x18d   : > { %v709_v1 = vadd.f32 %v1604_v36, %v708_v62 }
 0x18f   : > { %v769_v3 = vmax.f32 %v709_v1, 0.0 }
 0x191   : > { %v794_v6 = vpack.c.bf16 %v769_v3, %v768_v2 }
 0x193   : > { %910 = vmatmul.bf16.gmra.mxu2 %v794_v6 }
 0x194   : > { %v711_v7 = vpop.f32.mrf.mxu1 }
 0x195   : > { %v712_v9 = vadd.f32 %v1604_v36, %v711_v7 }
 0x197   : > { %750 = vmatmul.bf16.gmra.mxu3 %v598_v8  ;;  %v770_v12 = vmax.f32 %v712_v9, 0.0 }
 0x19c   : > { %v713_v10 = vpop.f32.mrf.mxu1 }
 0x19d   : > { %v714_v11 = vadd.f32 %v1604_v36, %v713_v10 }
 0x19f   : > { %v771_v20 = vmax.f32 %v714_v11, 0.0 }
 0x1a1   : > { %v795_v13 = vpack.c.bf16 %v771_v20, %v770_v12 }
 0x1a3   : > { %915 = vmatmul.bf16.gmra.mxu2 %v795_v13 }
 0x1a4   : > { %v716_v14 = vpop.f32.mrf.mxu1 }
 0x1a5   : > { %v717_v15 = vadd.f32 %v1604_v36, %v716_v14 }
 0x1a7   : > { %v772_v18 = vmax.f32 %v717_v15, 0.0 }
 0x1ac   : > { %v718_v16 = vpop.f32.mrf.mxu1 }
 0x1ad   : > { %v719_v17 = vadd.f32 %v1604_v36, %v718_v16 }
 0x1af   : > { %v773_v19 = vmax.f32 %v719_v17, 0.0 }
 0x1b1   : > { %v796_v21 = vpack.c.bf16 %v773_v19, %v772_v18 }
 0x1b3   : > { %920 = vmatmul.bf16.gmra.mxu2 %v796_v21 }
 0x1b4   : > { %v721_v23 = vpop.f32.mrf.mxu1 }
 0x1b5   : > { %v722_v26 = vadd.f32 %v1604_v36, %v721_v23 }
 0x1b6   : > { %v881_v24 = vpop.f32.mrf.mxu2 }
 0x1b7   : > { %v882_v25 = vadd.f32 %v1644_v22, %v881_v24  ;;  %v774_v30 = vmax.f32 %v722_v26, 0.0 }
 0x1b9   : > { %961 = vst [vmem:[%s1647_s20] sm:$0xff] %v882_v25 }
 0x1bc   : > { %v723_v27 = vpop.f32.mrf.mxu1 }
 0x1bd   : > { %v724_v28 = vadd.f32 %v1604_v36, %v723_v27 }
 0x1be   : > { %v883_v29 = vpop.f32.mrf.mxu2 }
 0x1bf   : > { %v775_v31 = vmax.f32 %v724_v28, 0.0  ;;  %v884_v32 = vadd.f32 %v1644_v22, %v883_v29 }
 0x1c1   : > { %962 = vst [vmem:[%s1647_s20 + $0x8] sm:$0xff] %v884_v32  ;;  %v797_v33 = vpack.c.bf16 %v775_v31, %v774_v30 }
 0x1c3   : > { %925 = vmatmul.bf16.gmra.mxu2 %v797_v33 }
 0x1c4   : > { %v726_v34 = vpop.f32.mrf.mxu1 }
 0x1c5   : > { %v727_v38 = vadd.f32 %v1604_v36, %v726_v34 }
 0x1c6   : > { %v886_v35 = vpop.f32.mrf.mxu2 }
 0x1c7   : > { %v887_v37 = vadd.f32 %v1644_v22, %v886_v35  ;;  %v776_v42 = vmax.f32 %v727_v38, 0.0 }
 0x1c9   : > { %963 = vst [vmem:[%s1647_s20 + $0x10] sm:$0xff] %v887_v37 }
 0x1cc   : > { %v728_v39 = vpop.f32.mrf.mxu1 }
 0x1cd   : > { %v729_v40 = vadd.f32 %v1604_v36, %v728_v39 }
 0x1ce   : > { %v888_v41 = vpop.f32.mrf.mxu2 }
 0x1cf   : > { %v777_v43 = vmax.f32 %v729_v40, 0.0  ;;  %v889_v44 = vadd.f32 %v1644_v22, %v888_v41 }
 0x1d1   : > { %964 = vst [vmem:[%s1647_s20 + $0x18] sm:$0xff] %v889_v44  ;;  %v798_v45 = vpack.c.bf16 %v777_v43, %v776_v42 }
 0x1d3   : > { %930 = vmatmul.bf16.gmra.mxu2 %v798_v45 }
 0x1d4   : > { %v731_v46 = vpop.f32.mrf.mxu1 }
 0x1d5   : > { %v732_v49 = vadd.f32 %v1604_v36, %v731_v46 }
 0x1d6   : > { %v891_v47 = vpop.f32.mrf.mxu2 }
 0x1d7   : > { %v892_v48 = vadd.f32 %v1644_v22, %v891_v47  ;;  %v778_v53 = vmax.f32 %v732_v49, 0.0 }
 0x1d9   : > { %965 = vst [vmem:[%s1647_s20 + $0x20] sm:$0xff] %v892_v48 }
 0x1dc   : > { %v733_v50 = vpop.f32.mrf.mxu1 }
 0x1dd   : > { %v734_v51 = vadd.f32 %v1604_v36, %v733_v50 }
 0x1de   : > { %v893_v52 = vpop.f32.mrf.mxu2 }
 0x1df   : > { %v779_v54 = vmax.f32 %v734_v51, 0.0  ;;  %v894_v55 = vadd.f32 %v1644_v22, %v893_v52 }
 0x1e1   : > { %966 = vst [vmem:[%s1647_s20 + $0x28] sm:$0xff] %v894_v55  ;;  %v799_v56 = vpack.c.bf16 %v779_v54, %v778_v53 }
 0x1e3   : > { %935 = vmatmul.bf16.gmra.mxu2 %v799_v56 }
 0x1e6   : > { %v896_v57 = vpop.f32.mrf.mxu2 }
 0x1e7   : > { %v897_v58 = vadd.f32 %v1644_v22, %v896_v57 }
 0x1e9   : > { %967 = vst [vmem:[%s1647_s20 + $0x30] sm:$0xff] %v897_v58 }
 0x1ea   : > { %v736_v59 = vpop.f32.mrf.mxu3 }
 0x1eb   : > { %v737_v62 = vadd.f32 %v1604_v36, %v736_v59 }
 0x1ed   : > { %v780_v1 = vmax.f32 %v737_v62, 0.0 }
 0x1ee   : > { %v898_v60 = vpop.f32.mrf.mxu2 }
 0x1ef   : > { %v899_v61 = vadd.f32 %v1644_v22, %v898_v60 }
 0x1f1   : > { %968 = vst [vmem:[%s1647_s20 + $0x38] sm:$0xff] %v899_v61 }
 0x1f2   : > { %v738_v63 = vpop.f32.mrf.mxu3 }
 0x1f3   : > { %v739_v0 = vadd.f32 %v1604_v36, %v738_v63 }
 0x1f5   : > { %v781_v2 = vmax.f32 %v739_v0, 0.0 }
 0x1f6   : > { %v901_v3 = vpop.f32.mrf.mxu2 }
 0x1f7   : > { %v800_v4 = vpack.c.bf16 %v781_v2, %v780_v1  ;;  %v902_v5 = vadd.f32 %v1644_v22, %v901_v3 }
 0x1f9   : > { %969 = vst [vmem:[%s1647_s20 + $0x40] sm:$0xff] %v902_v5  ;;  %940 = vmatmul.bf16.vlgmr.msra.gmra.mxu3 %v800_v4 }
 0x1fa   : > { %v741_v6 = vpop.f32.mrf.mxu3 }
 0x1fb   : > { %v742_v9 = vadd.f32 %v1604_v36, %v741_v6 }
 0x1fd   : > { %v782_v12 = vmax.f32 %v742_v9, 0.0 }
 0x1fe   : > { %v903_v7 = vpop.f32.mrf.mxu2 }
 0x1ff   : > { %v904_v8 = vadd.f32 %v1644_v22, %v903_v7 }
 0x201   : > { %970 = vst [vmem:[%s1647_s20 + $0x48] sm:$0xff] %v904_v8 }
 0x202   : > { %v743_v10 = vpop.f32.mrf.mxu3 }
 0x203   : > { %v744_v11 = vadd.f32 %v1604_v36, %v743_v10 }
 0x205   : > { %v783_v20 = vmax.f32 %v744_v11, 0.0 }
 0x206   : > { %v906_v13 = vpop.f32.mrf.mxu2 }
 0x207   : > { %v907_v14 = vadd.f32 %v1644_v22, %v906_v13  ;;  %v801_v15 = vpack.c.bf16 %v783_v20, %v782_v12 }
 0x209   : > { %971 = vst [vmem:[%s1647_s20 + $0x50] sm:$0xff] %v907_v14  ;;  %945 = vmatmul.bf16.gmra.mxu3 %v801_v15 }
 0x20a   : > { %v746_v16 = vpop.f32.mrf.mxu3 }
 0x20b   : > { %v747_v19 = vadd.f32 %v1604_v36, %v746_v16 }
 0x20d   : > { %v784_v24 = vmax.f32 %v747_v19, 0.0 }
 0x20e   : > { %v908_v17 = vpop.f32.mrf.mxu2 }
 0x20f   : > { %v909_v18 = vadd.f32 %v1644_v22, %v908_v17 }
 0x211   : > { %972 = vst [vmem:[%s1647_s20 + $0x58] sm:$0xff] %v909_v18 }
 0x212   : > { %v748_v21 = vpop.f32.mrf.mxu3 }
 0x213   : > { %v749_v23 = vadd.f32 %v1604_v36, %v748_v21 }
 0x215   : > { %v785_v25 = vmax.f32 %v749_v23, 0.0 }
 0x216   : > { %v911_v26 = vpop.f32.mrf.mxu2 }
 0x217   : > { %v912_v27 = vadd.f32 %v1644_v22, %v911_v26  ;;  %v802_v28 = vpack.c.bf16 %v785_v25, %v784_v24 }
 0x219   : > { %973 = vst [vmem:[%s1647_s20 + $0x60] sm:$0xff] %v912_v27  ;;  %950 = vmatmul.bf16.gmra.mxu3 %v802_v28 }
 0x21a   : > { %v751_v29 = vpop.f32.mrf.mxu3 }
 0x21b   : > { %v752_v32 = vadd.f32 %v1604_v36, %v751_v29 }
 0x21d   : > { %v786_v35 = vmax.f32 %v752_v32, 0.0 }
 0x21e   : > { %v913_v30 = vpop.f32.mrf.mxu2 }
 0x21f   : > { %v914_v31 = vadd.f32 %v1644_v22, %v913_v30 }
 0x221   : > { %974 = vst [vmem:[%s1647_s20 + $0x68] sm:$0xff] %v914_v31 }
 0x222   : > { %v753_v33 = vpop.f32.mrf.mxu3 }
 0x223   : > { %v754_v34 = vadd.f32 %v1604_v36, %v753_v33 }
 0x225   : > { %v787_v37 = vmax.f32 %v754_v34, 0.0 }
 0x226   : > { %v916_v38 = vpop.f32.mrf.mxu2 }
 0x227   : > { %v917_v39 = vadd.f32 %v1644_v22, %v916_v38  ;;  %v803_v40 = vpack.c.bf16 %v787_v37, %v786_v35 }
 0x229   : > { %975 = vst [vmem:[%s1647_s20 + $0x70] sm:$0xff] %v917_v39  ;;  %955 = vmatmul.bf16.gmra.mxu3 %v803_v40 }
 0x22e   : > { %v918_v41 = vpop.f32.mrf.mxu2 }
 0x22f   : > { %v919_v42 = vadd.f32 %v1644_v22, %v918_v41 }
 0x231   : > { %976 = vst [vmem:[%s1647_s20 + $0x78] sm:$0xff] %v919_v42 }
 0x236   : > { %v921_v43 = vpop.f32.mrf.mxu2 }
 0x237   : > { %v922_v44 = vadd.f32 %v1644_v22, %v921_v43 }
 0x239   : > { %977 = vst [vmem:[%s1647_s20 + $0x80] sm:$0xff] %v922_v44 }
 0x23e   : > { %v923_v36 = vpop.f32.mrf.mxu2 }
 0x23f   : > { %v924_v45 = vadd.f32 %v1644_v22, %v923_v36 }
 0x241   : > { %978 = vst [vmem:[%s1647_s20 + $0x88] sm:$0xff] %v924_v45 }
 0x246   : > { %v926_v46 = vpop.f32.mrf.mxu2 }
 0x247   : > { %v927_v47 = vadd.f32 %v1644_v22, %v926_v46 }
 0x249   : > { %979 = vst [vmem:[%s1647_s20 + $0x90] sm:$0xff] %v927_v47 }
 0x24e   : > { %v928_v48 = vpop.f32.mrf.mxu2 }
 0x24f   : > { %v929_v49 = vadd.f32 %v1644_v22, %v928_v48 }
 0x251   : > { %980 = vst [vmem:[%s1647_s20 + $0x98] sm:$0xff] %v929_v49 }
 0x256   : > { %v931_v50 = vpop.f32.mrf.mxu2 }
 0x257   : > { %v932_v51 = vadd.f32 %v1644_v22, %v931_v50 }
 0x259   : > { %981 = vst [vmem:[%s1647_s20 + $0xa0] sm:$0xff] %v932_v51 }
 0x25e   : > { %v933_v52 = vpop.f32.mrf.mxu2 }
 0x25f   : > { %v934_v53 = vadd.f32 %v1644_v22, %v933_v52 }
 0x261   : > { %982 = vst [vmem:[%s1647_s20 + $0xa8] sm:$0xff] %v934_v53 }
 0x266   : > { %v936_v54 = vpop.f32.mrf.mxu2 }
 0x267   : > { %v937_v55 = vadd.f32 %v1644_v22, %v936_v54 }
 0x269   : > { %983 = vst [vmem:[%s1647_s20 + $0xb0] sm:$0xff] %v937_v55 }
 0x26e   : > { %v938_v56 = vpop.f32.mrf.mxu2 }
 0x26f   : > { %v939_v57 = vadd.f32 %v1644_v22, %v938_v56 }
 0x271   : > { %984 = vst [vmem:[%s1647_s20 + $0xb8] sm:$0xff] %v939_v57 }
 0x27c   : > { %v941_v58 = vpop.f32.mrf.mxu3 }
 0x27d   : > { %v942_v59 = vadd.f32 %v1644_v22, %v941_v58 }
 0x27f   : > { %985 = vst [vmem:[%s1647_s20 + $0xc0] sm:$0xff] %v942_v59 }
 0x284   : > { %v943_v60 = vpop.f32.mrf.mxu3 }
 0x285   : > { %v944_v61 = vadd.f32 %v1644_v22, %v943_v60 }
 0x287   : > { %986 = vst [vmem:[%s1647_s20 + $0xc8] sm:$0xff] %v944_v61 }
 0x28c   : > { %v946_v62 = vpop.f32.mrf.mxu3 }
 0x28d   : > { %v947_v63 = vadd.f32 %v1644_v22, %v946_v62 }
 0x28f   : > { %987 = vst [vmem:[%s1647_s20 + $0xd0] sm:$0xff] %v947_v63 }
 0x294   : > { %v948_v0 = vpop.f32.mrf.mxu3 }
 0x295   : > { %v949_v1 = vadd.f32 %v1644_v22, %v948_v0 }
 0x297   : > { %988 = vst [vmem:[%s1647_s20 + $0xd8] sm:$0xff] %v949_v1 }
 0x29c   : > { %v951_v2 = vpop.f32.mrf.mxu3 }
 0x29d   : > { %v952_v3 = vadd.f32 %v1644_v22, %v951_v2 }
 0x29f   : > { %989 = vst [vmem:[%s1647_s20 + $0xe0] sm:$0xff] %v952_v3 }
 0x2a4   : > { %v953_v4 = vpop.f32.mrf.mxu3 }
 0x2a5   : > { %v954_v5 = vadd.f32 %v1644_v22, %v953_v4 }
 0x2a7   : > { %990 = vst [vmem:[%s1647_s20 + $0xe8] sm:$0xff] %v954_v5 }
 0x2ac   : > { %v956_v6 = vpop.f32.mrf.mxu3 }
 0x2ad   : > { %v957_v7 = vadd.f32 %v1644_v22, %v956_v6 }
 0x2af   : > { %991 = vst [vmem:[%s1647_s20 + $0xf0] sm:$0xff] %v957_v7 }
 0x2b4   : > { %v958_v8 = vpop.f32.mrf.mxu3 }
 0x2b5   : > { %v959_v9 = vadd.f32 %v1644_v22, %v958_v8 }
 0x2b7   : > { %992 = vst [vmem:[%s1647_s20 + $0xf8] sm:$0xff] %v959_v9 }
 0x2b8   : > { %1359 = shalt.err (!%p1356_p3)
}
 0x2b9   : > { %s1396_s16 = smov 128   ;;  %s1397_s20 = smov 8  }
 0x2ba   : > { %1288 = dma.vmem_to_hbm [thread:$0]  (%p1476_p5), %s1007_s9, 4096, %s1009_s13, %s994_s14, %s1396_s16, %s1396_s16, %s1397_s20  }
 0x2bb PF: > { %p1294_p4 = scmp.ge.s32.totalorder %s1394_s27, 2  ;;  %s1023_s23 = sand.u32 1, %s1382_s24  }
 0x2bc   : > { %s1024_s29 = scalar_lea.sflag [#allocation3], %s1023_s23 }
 0x2bd   : > { %p1291_p7 = pnand %p1294_p4, %p1480_p6 }
 0x2bf   : > { %p1292_p8 = pneg %p1291_p7 }
 0x2c1   : > { %1377 = dma.done.wait (%p1292_p8), %s1024_s29, 4096  }
 0x2c2   : > { %1379 = vsyncadd (%p1292_p8), %s1024_s29, 4294963200  ;;  %p17_p9 = scmp.ge.s32.totalorder %s1463_s30, 4   ;;  %s1770_s24 = smov %s1386_s25 }
 0x2c3   : > { %s1771_s25 = smov %s1390_s26  ;;  %s1772_s26 = smov %s1474_s10 }
 0x2c4   : > { %s1773_s27 = smov %s1463_s30  ;;  %19 = sbr.rel (!%p17_p9) target bundleno = 3 (0x3), region = 83 }
 0x2c9   :  { %1030 = vsyncpa [#allocation3], 1 }
 0x2ca   :  { %1032 = vsyncpa [#allocation3 + $0x1], 1 }

</bundles_post_ra>
